<compile_context>
chip_gen: v5e
topology: v5e:2x2
jax: 0.10.0
libtpu: 0.0.40
codegen_flags: <defaults>
</compile_context>

<pallas_src>
import numpy as np
import jax
import jax.numpy as jnp
from jax.experimental import pallas as pl
from jax.experimental.pallas import tpu as pltpu


def _permute_kernel(u_ref, p_ref, o_ref):
    # u_ref: (tm, D) activations; p_ref: (D, D) one-hot permutation in u's
    # dtype (VMEM-resident, fetched once); o_ref: (tm, D).
    # Each column of P has exactly one 1.0, so the f32-accumulated product is
    # the exact column permutation u[:, inv_perm] for bf16 / f32 inputs alike.
    # (Bit-exactness with the default matmul precision is asserted in the
    #  self-test below; pin precision=HIGHEST if a future Mosaic default ever
    #  demotes f32 operands to a single bf16 pass.)
    o_ref[...] = jnp.dot(
        u_ref[...], p_ref[...], preferred_element_type=jnp.float32
    ).astype(o_ref.dtype)


def permute_forward(u, inv_perm):
    """Pallas equivalent of Permute.forward: u[:, inv_perm]."""
    B, D = u.shape
    inv_perm = np.asarray(inv_perm)
    assert inv_perm.shape == (D,)

    # Integer / bool inputs: no MXU integer path (none at all on v7x) and the
    # f32 accumulator loses bits >= 2^24 -- a static XLA gather is exact.
    if not jnp.issubdtype(u.dtype, jnp.floating):
        return u[:, inv_perm]

    itemsize = u.dtype.itemsize
    row_bytes = D * itemsize

    # VMEM budget from the actual device (64 MiB/TC on v7x, 128 MiB v5e/v6e).
    try:
        vmem_cap = int(pltpu.get_tpu_info().vmem_capacity_bytes)
    except Exception:
        vmem_cap = 64 << 20  # conservative fallback (v7x per-TensorCore)
    budget = int(vmem_cap * 0.70)  # headroom for compiler-internal scratch

    p_bytes = D * D * itemsize
    avail = budget - 2 * p_bytes  # assume the pipeline double-buffers P too
    if avail <= 0:
        # P does not fit in VMEM (very large D): the right move there is an
        # XLA gather or fusing the permutation into a neighbour kernel's
        # BlockSpec index math.
        # TODO(synk): feature-tiled 2-D grid variant for D*D > VMEM budget.
        return u[:, inv_perm]

    # One-hot permutation matrix in u's dtype (0.0 / 1.0 exact in any float).
    perm_mat = jnp.asarray(
        np.arange(D)[:, None] == inv_perm[None, :], dtype=u.dtype
    )

    # Ragged batch: pad to a multiple of 8 sublanes, slice off at the end.
    pad_b = (-B) % 8
    u_in = jnp.pad(u, ((0, pad_b), (0, 0))) if pad_b else u
    Bp = B + pad_b

    # D-aware batch tile: largest tm whose double-buffered u + out blocks fit
    # the remaining budget and divides Bp, preferring >= 2 grid steps so the
    # "parallel" axis can shard across the two TensorCores on v7x.
    per_row = 4 * row_bytes  # 2 u buffers + 2 out buffers per batch row
    tm_cap = max(8, (avail // per_row) // 8 * 8)
    candidates = [t for t in (2048, 1024, 512, 256, 128, 64, 32, 16, 8)
                  if t <= tm_cap and Bp % t == 0]
    multi_step = [t for t in candidates if Bp // t >= 2]
    tm = (multi_step or candidates or [Bp])[0]
    grid = (Bp // tm,)

    footprint = 4 * tm * row_bytes + 2 * p_bytes
    vmem_limit = int(min(max(int(footprint * 1.25), 8 << 20),
                         int(vmem_cap * 0.9)))

    cost = pl.CostEstimate(
        flops=2 * Bp * D * D,
        transcendentals=0,
        bytes_accessed=(Bp * D * itemsize      # read u (streamed once)
                        + p_bytes              # read P (resident, read once)
                        + Bp * D * itemsize),  # write out (once)
    )

    out = pl.pallas_call(
        _permute_kernel,
        out_shape=jax.ShapeDtypeStruct((Bp, D), u.dtype),
        grid_spec=pltpu.PrefetchScalarGridSpec(
            num_scalar_prefetch=0,
            grid=grid,
            in_specs=[
                pl.BlockSpec((tm, D), lambda i: (i, 0)),  # u: one HBM pass
                pl.BlockSpec((D, D), lambda i: (0, 0)),   # P: VMEM-resident
            ],
            out_specs=pl.BlockSpec((tm, D), lambda i: (i, 0)),  # full-row store
        ),
        compiler_params=pltpu.CompilerParams(
            dimension_semantics=("parallel",),
            vmem_limit_bytes=vmem_limit,
        ),
        cost_estimate=cost,
    )(u_in, perm_mat)

    return out[:B] if pad_b else out


if __name__ == "__main__":
    rng = np.random.RandomState(0)

    # Case 1: module-scale tiny D with ragged batch (exercises batch padding
    # to a sublane multiple and full-extent small-D blocks).
    B1, D1 = 10, 8
    perm1 = rng.permutation(D1)
    inv1 = np.argsort(perm1)
    u1 = jax.random.uniform(jax.random.PRNGKey(0), (B1, D1), dtype=jnp.float32)
    out1 = jax.block_until_ready(permute_forward(u1, inv1))
    np.testing.assert_array_equal(np.asarray(out1), np.asarray(u1)[:, inv1])

    # Case 2: lane-dense path (D multiple of 128), resident P, 2-step grid.
    B2, D2 = 64, 256
    perm2 = rng.permutation(D2)
    inv2 = np.argsort(perm2)
    u2 = jax.random.uniform(jax.random.PRNGKey(1), (B2, D2), dtype=jnp.float32)
    out2 = jax.block_until_ready(permute_forward(u2, inv2))
    np.testing.assert_array_equal(np.asarray(out2), np.asarray(u2)[:, inv2])

    # Case 3: bf16 activations (native single-pass MXU path).
    B3, D3 = 32, 128
    perm3 = rng.permutation(D3)
    inv3 = np.argsort(perm3)
    u3 = jax.random.uniform(jax.random.PRNGKey(2), (B3, D3), dtype=jnp.bfloat16)
    out3 = jax.block_until_ready(permute_forward(u3, inv3))
    np.testing.assert_array_equal(
        np.asarray(out3).astype(np.float32),
        np.asarray(u3).astype(np.float32)[:, inv3],
    )

    print("KERNEL_OK")
</pallas_src>

<mosaic_0001>
module attributes {stable_mosaic.version = 11 : i64} {
  func.func @_permute_kernel(%arg0: i32, %arg1: memref<8x8xf32, #tpu.memory_space<vmem>>, %arg2: memref<8x8xf32, #tpu.memory_space<vmem>>, %arg3: memref<8x8xf32, #tpu.memory_space<vmem>>) attributes {dimension_semantics = [#tpu.dimension_semantics<parallel>], iteration_bounds = array<i64: 2>, scalar_prefetch = 0 : i64, scratch_operands = 0 : i64, tpu.core_type = #tpu.core_type<tc>, window_params = [{transform_indices = @transform_0, window_bounds = array<i64: 8, 8>}, {pipeline_mode = #tpu.pipeline_mode<synchronous>, transform_indices = @transform_1, window_bounds = array<i64: 8, 8>}, {transform_indices = @transform_2, window_bounds = array<i64: 8, 8>}]} {
    %c0 = arith.constant 0 : index
    %c0_0 = arith.constant 0 : index
    %0 = vector.load %arg1[%c0, %c0_0] : memref<8x8xf32, #tpu.memory_space<vmem>>, vector<8x8xf32>
    %c0_1 = arith.constant 0 : index
    %c0_2 = arith.constant 0 : index
    %1 = vector.load %arg2[%c0_1, %c0_2] : memref<8x8xf32, #tpu.memory_space<vmem>>, vector<8x8xf32>
    %cst = arith.constant dense<0.000000e+00> : vector<8x8xf32>
    %2 = tpu.matmul %0, %1, %cst {dimension_numbers = #tpu.dot_dimension_numbers<[1], [0], [0], [1], [0, 0, 1, 1], [], []>} : vector<8x8xf32>, vector<8x8xf32>, vector<8x8xf32> -> vector<8x8xf32>
    %c0_3 = arith.constant 0 : index
    %c0_4 = arith.constant 0 : index
    %3 = vector.load %arg3[%c0_3, %c0_4] : memref<8x8xf32, #tpu.memory_space<vmem>>, vector<8x8xf32>
    tpu.vector_store %arg3[%c0_3, %c0_4], %2 {strides = array<i32>} : memref<8x8xf32, #tpu.memory_space<vmem>>, vector<8x8xf32>,
    return
  }
  func.func @transform_0(%arg0: i32) -> (i32, i32) {
    %c0_i32 = arith.constant 0 : i32
    %c0_i32_0 = arith.constant 0 : i32
    return %arg0, %c0_i32 : i32, i32
  }
  func.func @transform_1(%arg0: i32) -> (i32, i32) {
    %c0_i32 = arith.constant 0 : i32
    %c0_i32_0 = arith.constant 0 : i32
    %c0_i32_1 = arith.constant 0 : i32
    return %c0_i32, %c0_i32_0 : i32, i32
  }
  func.func @transform_2(%arg0: i32) -> (i32, i32) {
    %c0_i32 = arith.constant 0 : i32
    %c0_i32_0 = arith.constant 0 : i32
    return %arg0, %c0_i32 : i32, i32
  }
}

</mosaic_0001>

<bundles_post_ra>
// kernel: tpu_custom_call.1
= control target key start
LH: loop header
LB: loop body
LE: loop exit
PB: predicated region body
PF: predicated region fallthrough
CT: control target
= control target key end

     0   :  { %s241_s9 = smov 0   ;;  %s269_s0 = inlined_call_operand.vmem [shape: f32[16,8], index: 0, kind: input, shape index: {}]   ;;  %s270_s1 = inlined_call_operand.vmem [shape: f32[8,8], index: 1, kind: input, shape index: {}]   ;;  %s271_s2 = inlined_call_operand.vmem [shape: f32[16,8], index: 2, kind: output, shape index: {}]  }
   0x1 LB: > { %s219_s10 = sadd.s32 4294967295, %s243_s9   ;;  %p223_p0 = scmp.ge.s32.totalorder %s243_s9, 1  ;;  %s243_s9 = sphi %s241_s9, %s12_s9  }
   0x2   : > { %p111_p1 = scmp.lt.s32.totalorder %s243_s9, 3 }
   0x4   : > { %p112_p2 = pnand %p223_p0, %p111_p1 }
   0x5   : > { %p131_p3 = scmp.lt.s32.totalorder (!%p112_p2), %s219_s10, 1 }
   0x6   : > { %115 = sbr.rel (%p112_p2) target bundleno = 142 (0x8e), region = 28 }
   0xb   : > { %v140_v0 = vld [vmem:[%s270_s1] sm:$0xff]  ;;  %s273_s10 = smov (!%p131_p3, %s219_s10), 1  ;;  %vm141_vm0 = vcmask 64512  }
   0xc   : > { %160 = vmatpush.msra.mxu0 %v140_v0  ;;  %s224_s13 = sshll.u32 %s273_s10, 3 }
   0xd   : > { %s134_s16 = scalar_lea.vmem %s269_s0, %s224_s13  ;;  %s138_s19 = scalar_lea.vmem %s271_s2, %s224_s13 }
   0xe   : > { %v139_v1 = vld [vmem:[%s134_s16] sm:$0xff] }
   0xf   : > { %226 = vmatmul.msk.f32.vlgmr.msra.gmra.mxu0 %vm141_vm0, %v139_v1 }
  0x8c   : > { %v162_v2 = vpop.f32.mrf.mxu0 }
  0x8d   : > { %165 = vst.msk [vmem:[%s138_s19] sm:$0xff] %vm141_vm0, %v162_v2 }
  0x8e PF: > { %s12_s9 = sadd.s32 1, %s243_s9  }
  0x8f   : > { %p9_p4 = scmp.ge.s32.totalorder %s12_s9, 4  }
  0x91   :  { %11 = sbr.rel (!%p9_p4) target bundleno = 1 (0x1), region = 58 }

</bundles_post_ra>
